<compile_context>
chip_gen: v7x
topology: tpu7x:2x2x1
jax: 0.10.0
libtpu: 0.0.40
codegen_flags: <defaults>
</compile_context>

<pallas_src>
import math

import jax
import jax.numpy as jnp
from jax import lax
from jax.experimental import pallas as pl
from jax.experimental.pallas import tpu as pltpu


def _pick_tile(n, preferred=512):
    """Largest MXU-friendly tile <= preferred that divides n (else full n)."""
    for t in (1024, 512, 256, 128):
        if t <= preferred and t <= n and n % t == 0:
            return t
    # TODO(synk): ragged (masked) tiles for long sequences with no 128-multiple
    # divisor; the full-N fallback is fine for small shapes but could exceed
    # v7x's 64 MiB VMEM for very long, oddly-sized sequences.
    return n


# ---------------------------------------------------------------------------
# Projection kernel: x @ W_g for a stack of per-head weight matrices.
#   x:       (B, N, D_in)
#   w_stack: (G, D_in, Dh)        (G = heads, 2*heads or 3*heads)
#   out:     (B, G, N, Dh)        head-split layout, no bias (to_q/to_k/to_v)
# The whole weight stack stays VMEM-resident (constant block index); each x
# tile is DMA'd once and feeds G unrolled MXU calls.
# ---------------------------------------------------------------------------

def _proj_heads_kernel(x_ref, w_ref, o_ref):
    # x_ref: (1, tn, D_in), w_ref: (G, D_in, Dh), o_ref: (1, G, tn, Dh)
    x = x_ref[0]
    for g in range(w_ref.shape[0]):            # static unroll over heads
        o_ref[0, g] = jnp.dot(
            x, w_ref[g], preferred_element_type=jnp.float32
        ).astype(o_ref.dtype)


def project_heads(x, w_stack, *, tn_pref=512):
    B, N, D_in = x.shape
    G, _, Dh = w_stack.shape
    tn = _pick_tile(N, tn_pref)
    return pl.pallas_call(
        _proj_heads_kernel,
        out_shape=jax.ShapeDtypeStruct((B, G, N, Dh), x.dtype),
        grid_spec=pltpu.PrefetchScalarGridSpec(
            num_scalar_prefetch=0,
            grid=(B, N // tn),
            in_specs=[
                pl.BlockSpec((1, tn, D_in), lambda b, n: (b, n, 0)),
                pl.BlockSpec((G, D_in, Dh), lambda b, n: (0, 0, 0)),
            ],
            out_specs=pl.BlockSpec((1, G, tn, Dh), lambda b, n: (b, 0, n, 0)),
        ),
        compiler_params=pltpu.CompilerParams(
            dimension_semantics=("parallel", "parallel")),
    )(x, w_stack)


# ---------------------------------------------------------------------------
# Flash-attention kernel (online softmax), one (batch, head, q-tile) per
# resident accumulator, KV tiles streamed along the last ("arbitrary") axis.
# The softmax scale is pre-folded into w_q, so there is no per-step scaling.
# ---------------------------------------------------------------------------

def _flash_attention_kernel(q_ref, k_ref, v_ref, o_ref, m_ref, l_ref, acc_ref):
    ki = pl.program_id(3)

    @pl.when(ki == 0)
    def _():
        m_ref[...] = jnp.full(m_ref.shape, -jnp.inf, dtype=jnp.float32)
        l_ref[...] = jnp.zeros(l_ref.shape, dtype=jnp.float32)
        acc_ref[...] = jnp.zeros(acc_ref.shape, dtype=jnp.float32)

    # q/k/v stay in their native (bf16) dtype; MXU accumulates in f32.
    q = q_ref[0, 0]                               # (tq, Dh)
    k = k_ref[0, 0]                               # (tk, Dh)
    v = v_ref[0, 0]                               # (tk, Dh)

    # scores = q @ k^T  (contract head dim)
    s = lax.dot_general(q, k, (((1,), (1,)), ((), ())),
                        preferred_element_type=jnp.float32)   # (tq, tk) f32

    m_prev = m_ref[...]
    m_new = jnp.maximum(m_prev, jnp.max(s, axis=-1, keepdims=True))
    alpha = jnp.exp(m_prev - m_new)               # f32 softmax math
    p = jnp.exp(s - m_new)

    l_ref[...] = alpha * l_ref[...] + jnp.sum(p, axis=-1, keepdims=True)
    acc_ref[...] = alpha * acc_ref[...] + jnp.dot(
        p.astype(v.dtype), v, preferred_element_type=jnp.float32)
    m_ref[...] = m_new

    @pl.when(ki == pl.num_programs(3) - 1)
    def _():
        inv_l = pl.reciprocal(l_ref[...], approx=True)
        o_ref[0, 0] = (acc_ref[...] * inv_l).astype(o_ref.dtype)


def flash_attention(q_src, k_src, v_src, *, heads, q_off, k_off, v_off,
                    tq_pref=512, tk_pref=512):
    """q_src/k_src/v_src: (B, G, N, Dh) head-split stacks (may be the same
    array); head h reads q at group q_off+h, k at k_off+h, v at v_off+h.
    Returns (B, heads, Nq, Dh)."""
    B, _, Nq, Dh = q_src.shape
    _, _, Nk, _ = k_src.shape
    tq = _pick_tile(Nq, tq_pref)
    tk = _pick_tile(Nk, tk_pref)

    itemsize = jnp.dtype(q_src.dtype).itemsize
    cost = pl.CostEstimate(
        flops=int(4 * B * heads * Nq * Nk * Dh),
        transcendentals=int(B * heads * Nq * Nk),
        bytes_accessed=int(itemsize * B * heads * Dh *
                           (2 * Nq + 2 * Nk * max(Nq // tq, 1))),
    )

    return pl.pallas_call(
        _flash_attention_kernel,
        out_shape=jax.ShapeDtypeStruct((B, heads, Nq, Dh), q_src.dtype),
        grid_spec=pltpu.PrefetchScalarGridSpec(
            num_scalar_prefetch=0,
            grid=(B, heads, Nq // tq, Nk // tk),
            in_specs=[
                pl.BlockSpec((1, 1, tq, Dh),
                             lambda b, h, qi, ki: (b, q_off + h, qi, 0)),
                pl.BlockSpec((1, 1, tk, Dh),
                             lambda b, h, qi, ki: (b, k_off + h, ki, 0)),
                pl.BlockSpec((1, 1, tk, Dh),
                             lambda b, h, qi, ki: (b, v_off + h, ki, 0)),
            ],
            out_specs=pl.BlockSpec((1, 1, tq, Dh),
                                   lambda b, h, qi, ki: (b, h, qi, 0)),
            scratch_shapes=[
                pltpu.VMEM((tq, 1), jnp.float32),    # running max  m
                pltpu.VMEM((tq, 1), jnp.float32),    # running sum  l
                pltpu.VMEM((tq, Dh), jnp.float32),   # accumulator
            ],
        ),
        compiler_params=pltpu.CompilerParams(
            dimension_semantics=("parallel", "parallel", "parallel",
                                 "arbitrary")),
        cost_estimate=cost,
    )(q_src, k_src, v_src)


# ---------------------------------------------------------------------------
# Output projection: consumes the head-split attention output directly and
# reduces over heads inside the kernel (unrolled dots over a resident weight
# stack) — no merge transpose, no head grid axis, no revolving accumulator.
#   o_heads: (B, H, Nq, Dh), w_o_stack: (H, Dh, Dq), b_o: (Dq,) -> (B, Nq, Dq)
# ---------------------------------------------------------------------------

def _out_proj_kernel(o_ref, w_ref, b_ref, out_ref):
    # o_ref: (1, H, tn, Dh), w_ref: (H, Dh, Dq), b_ref: (1, Dq), out: (1, tn, Dq)
    acc = jnp.dot(o_ref[0, 0], w_ref[0], preferred_element_type=jnp.float32)
    for h in range(1, o_ref.shape[1]):           # static unroll over heads
        acc = acc + jnp.dot(o_ref[0, h], w_ref[h],
                            preferred_element_type=jnp.float32)
    out_ref[0] = (acc + b_ref[...]).astype(out_ref.dtype)


def out_projection(o_heads, w_o_stack, b_o, *, out_dtype, tn_pref=512):
    B, H, Nq, Dh = o_heads.shape
    _, _, Dq = w_o_stack.shape
    tn = _pick_tile(Nq, tn_pref)
    b2 = b_o.reshape(1, Dq).astype(jnp.float32)
    return pl.pallas_call(
        _out_proj_kernel,
        out_shape=jax.ShapeDtypeStruct((B, Nq, Dq), out_dtype),
        grid_spec=pltpu.PrefetchScalarGridSpec(
            num_scalar_prefetch=0,
            grid=(B, Nq // tn),
            in_specs=[
                pl.BlockSpec((1, H, tn, Dh), lambda b, n: (b, 0, n, 0)),
                pl.BlockSpec((H, Dh, Dq), lambda b, n: (0, 0, 0)),
                pl.BlockSpec((1, Dq), lambda b, n: (0, 0)),
            ],
            out_specs=pl.BlockSpec((1, tn, Dq), lambda b, n: (b, n, 0)),
        ),
        compiler_params=pltpu.CompilerParams(
            dimension_semantics=("parallel", "parallel")),
    )(o_heads, w_o_stack, b2)


# ---------------------------------------------------------------------------
# Module wrapper
# ---------------------------------------------------------------------------

def init_params(key, query_dim, context_dim, heads, dim_head):
    inner_dim = heads * dim_head
    k1, k2, k3, k4, k5 = jax.random.split(key, 5)
    # Weights stored as (in_features, out_features) so y = x @ W (+ b).
    return {
        "w_q": jax.random.normal(k1, (query_dim, inner_dim), jnp.float32) * 0.05,
        "w_k": jax.random.normal(k2, (context_dim, inner_dim), jnp.float32) * 0.05,
        "w_v": jax.random.normal(k3, (context_dim, inner_dim), jnp.float32) * 0.05,
        "w_o": jax.random.normal(k4, (inner_dim, query_dim), jnp.float32) * 0.05,
        "b_o": jax.random.normal(k5, (query_dim,), jnp.float32) * 0.05,
    }


def memory_efficient_cross_attention(params, x, context=None, *,
                                     heads, dim_head,
                                     compute_dtype=jnp.bfloat16):
    """Forward pass of MemoryEfficientCrossAttention (eval mode, Dropout=id).

    compute_dtype feeds the MXU (bf16 by default: v6e/v7x-native); softmax
    math, m/l/acc and the output-projection accumulation stay f32."""
    scale = 1.0 / math.sqrt(dim_head)
    out_dtype = x.dtype

    def stack_heads(w, pre_scale=1.0):
        # (D_in, H*Dh) -> (H, D_in, Dh); weight-only transform, done in f32
        # (the softmax scale is folded here, before the bf16 cast).
        w = (w * pre_scale).reshape(w.shape[0], heads, dim_head).transpose(1, 0, 2)
        return w.astype(compute_dtype)

    xq = x.astype(compute_dtype)
    if context is None:
        # Self-attention: fuse q/k/v into a single projection pass over x.
        w_qkv = jnp.concatenate([stack_heads(params["w_q"], scale),
                                 stack_heads(params["w_k"]),
                                 stack_heads(params["w_v"])], axis=0)
        qkv = project_heads(xq, w_qkv)                      # (B, 3H, N, Dh)
        o_heads = flash_attention(qkv, qkv, qkv, heads=heads,
                                  q_off=0, k_off=heads, v_off=2 * heads)
    else:
        ctx = context.astype(compute_dtype)
        q_heads = project_heads(xq, stack_heads(params["w_q"], scale))
        w_kv = jnp.concatenate([stack_heads(params["w_k"]),
                                stack_heads(params["w_v"])], axis=0)
        kv_heads = project_heads(ctx, w_kv)                 # (B, 2H, Nk, Dh)
        o_heads = flash_attention(q_heads, kv_heads, kv_heads, heads=heads,
                                  q_off=0, k_off=0, v_off=heads)

    # to_out: Linear(inner_dim, query_dim) + Dropout(p) — dropout is identity
    # in eval mode, so only the biased projection remains.
    w_o_stack = params["w_o"].reshape(heads, dim_head, -1).astype(compute_dtype)
    return out_projection(o_heads, w_o_stack, params["b_o"], out_dtype=out_dtype)


# Pure-JAX (f32) reference for a sanity check.
def _reference(params, x, context, *, heads, dim_head):
    if context is None:
        context = x
    B, Nq, _ = x.shape
    q = x @ params["w_q"]
    k = context @ params["w_k"]
    v = context @ params["w_v"]

    def split(t):
        Bt, Nt, _ = t.shape
        return t.reshape(Bt, Nt, heads, dim_head).transpose(0, 2, 1, 3)

    qh, kh, vh = split(q), split(k), split(v)
    s = jnp.einsum("bhqd,bhkd->bhqk", qh, kh) / math.sqrt(dim_head)
    p = jax.nn.softmax(s, axis=-1)
    oh = jnp.einsum("bhqk,bhkd->bhqd", p, vh)
    o = oh.transpose(0, 2, 1, 3).reshape(B, Nq, heads * dim_head)
    return o @ params["w_o"] + params["b_o"]


if __name__ == "__main__":
    B = 2
    Nq = 384          # query tokens  (3 q-tiles of 128 at these small shapes)
    Nk = 384          # context tokens (3 kv-tiles -> exercises online softmax)
    query_dim = 128
    context_dim = 64
    heads = 4
    dim_head = 64

    key = jax.random.PRNGKey(0)
    kp, kx, kc = jax.random.split(key, 3)
    params = init_params(kp, query_dim, context_dim, heads, dim_head)
    x = jax.random.normal(kx, (B, Nq, query_dim), jnp.float32)
    context = jax.random.normal(kc, (B, Nk, context_dim), jnp.float32)

    out = memory_efficient_cross_attention(params, x, context,
                                           heads=heads, dim_head=dim_head)
    out = jax.block_until_ready(out)

    ref = _reference(params, x, context, heads=heads, dim_head=dim_head)
    assert out.shape == (B, Nq, query_dim), out.shape
    # bf16 operands feed the MXU, so allow bf16-level tolerance vs f32 ref.
    assert jnp.allclose(out, ref, atol=3e-2, rtol=3e-2), "mismatch vs reference"

    print("KERNEL_OK")
</pallas_src>

<mosaic_0001>
module attributes {stable_mosaic.version = 11 : i64} {
  func.func @_proj_heads_kernel(%arg0: i32, %arg1: i32, %arg2: memref<1x128x128xbf16, #tpu.memory_space<vmem>>, %arg3: memref<4x128x64xbf16, #tpu.memory_space<vmem>>, %arg4: memref<1x4x128x64xbf16, #tpu.memory_space<vmem>>) attributes {dimension_semantics = [#tpu.dimension_semantics<parallel>, #tpu.dimension_semantics<parallel>], iteration_bounds = array<i64: 2, 3>, scalar_prefetch = 0 : i64, scratch_operands = 0 : i64, tpu.core_type = #tpu.core_type<tc>, window_params = [{transform_indices = @transform_0, window_bounds = array<i64: 1, 128, 128>}, {pipeline_mode = #tpu.pipeline_mode<synchronous>, transform_indices = @transform_1, window_bounds = array<i64: 4, 128, 64>}, {transform_indices = @transform_2, window_bounds = array<i64: 1, 4, 128, 64>}]} {
    %c0 = arith.constant 0 : index
    %c0_0 = arith.constant 0 : index
    %c0_1 = arith.constant 0 : index
    %0 = vector.load %arg2[%c0, %c0_0, %c0_1] : memref<1x128x128xbf16, #tpu.memory_space<vmem>>, vector<1x128x128xbf16>
    %1 = vector.shape_cast %0 : vector<1x128x128xbf16> to vector<128x128xbf16>
    %c0_2 = arith.constant 0 : index
    %c0_3 = arith.constant 0 : index
    %c0_4 = arith.constant 0 : index
    %2 = vector.load %arg3[%c0_2, %c0_3, %c0_4] : memref<4x128x64xbf16, #tpu.memory_space<vmem>>, vector<1x128x64xbf16>
    %3 = vector.shape_cast %2 : vector<1x128x64xbf16> to vector<128x64xbf16>
    %cst = arith.constant dense<0.000000e+00> : vector<128x64xf32>
    %4 = tpu.matmul %1, %3, %cst {dimension_numbers = #tpu.dot_dimension_numbers<[1], [0], [0], [1], [0, 0, 1, 1], [], []>} : vector<128x128xbf16>, vector<128x64xbf16>, vector<128x64xf32> -> vector<128x64xf32>
    %5 = arith.truncf %4 : vector<128x64xf32> to vector<128x64xbf16>
    %c0_5 = arith.constant 0 : index
    %c0_6 = arith.constant 0 : index
    %c0_7 = arith.constant 0 : index
    %c0_8 = arith.constant 0 : index
    %6 = vector.load %arg4[%c0_5, %c0_6, %c0_7, %c0_8] : memref<1x4x128x64xbf16, #tpu.memory_space<vmem>>, vector<1x1x128x64xbf16>
    %7 = vector.shape_cast %6 : vector<1x1x128x64xbf16> to vector<128x64xbf16>
    %8 = vector.shape_cast %5 : vector<128x64xbf16> to vector<1x1x128x64xbf16>
    tpu.vector_store %arg4[%c0_5, %c0_6, %c0_7, %c0_8], %8 {strides = array<i32>} : memref<1x4x128x64xbf16, #tpu.memory_space<vmem>>, vector<1x1x128x64xbf16>,
    %c1 = arith.constant 1 : index
    %c0_9 = arith.constant 0 : index
    %c0_10 = arith.constant 0 : index
    %9 = vector.load %arg3[%c1, %c0_9, %c0_10] : memref<4x128x64xbf16, #tpu.memory_space<vmem>>, vector<1x128x64xbf16>
    %10 = vector.shape_cast %9 : vector<1x128x64xbf16> to vector<128x64xbf16>
    %cst_11 = arith.constant dense<0.000000e+00> : vector<128x64xf32>
    %11 = tpu.matmul %1, %10, %cst_11 {dimension_numbers = #tpu.dot_dimension_numbers<[1], [0], [0], [1], [0, 0, 1, 1], [], []>} : vector<128x128xbf16>, vector<128x64xbf16>, vector<128x64xf32> -> vector<128x64xf32>
    %12 = arith.truncf %11 : vector<128x64xf32> to vector<128x64xbf16>
    %c0_12 = arith.constant 0 : index
    %c1_13 = arith.constant 1 : index
    %c0_14 = arith.constant 0 : index
    %c0_15 = arith.constant 0 : index
    %13 = vector.load %arg4[%c0_12, %c1_13, %c0_14, %c0_15] : memref<1x4x128x64xbf16, #tpu.memory_space<vmem>>, vector<1x1x128x64xbf16>
    %14 = vector.shape_cast %13 : vector<1x1x128x64xbf16> to vector<128x64xbf16>
    %15 = vector.shape_cast %12 : vector<128x64xbf16> to vector<1x1x128x64xbf16>
    tpu.vector_store %arg4[%c0_12, %c1_13, %c0_14, %c0_15], %15 {strides = array<i32>} : memref<1x4x128x64xbf16, #tpu.memory_space<vmem>>, vector<1x1x128x64xbf16>,
    %c2 = arith.constant 2 : index
    %c0_16 = arith.constant 0 : index
    %c0_17 = arith.constant 0 : index
    %16 = vector.load %arg3[%c2, %c0_16, %c0_17] : memref<4x128x64xbf16, #tpu.memory_space<vmem>>, vector<1x128x64xbf16>
    %17 = vector.shape_cast %16 : vector<1x128x64xbf16> to vector<128x64xbf16>
    %cst_18 = arith.constant dense<0.000000e+00> : vector<128x64xf32>
    %18 = tpu.matmul %1, %17, %cst_18 {dimension_numbers = #tpu.dot_dimension_numbers<[1], [0], [0], [1], [0, 0, 1, 1], [], []>} : vector<128x128xbf16>, vector<128x64xbf16>, vector<128x64xf32> -> vector<128x64xf32>
    %19 = arith.truncf %18 : vector<128x64xf32> to vector<128x64xbf16>
    %c0_19 = arith.constant 0 : index
    %c2_20 = arith.constant 2 : index
    %c0_21 = arith.constant 0 : index
    %c0_22 = arith.constant 0 : index
    %20 = vector.load %arg4[%c0_19, %c2_20, %c0_21, %c0_22] : memref<1x4x128x64xbf16, #tpu.memory_space<vmem>>, vector<1x1x128x64xbf16>
    %21 = vector.shape_cast %20 : vector<1x1x128x64xbf16> to vector<128x64xbf16>
    %22 = vector.shape_cast %19 : vector<128x64xbf16> to vector<1x1x128x64xbf16>
    tpu.vector_store %arg4[%c0_19, %c2_20, %c0_21, %c0_22], %22 {strides = array<i32>} : memref<1x4x128x64xbf16, #tpu.memory_space<vmem>>, vector<1x1x128x64xbf16>,
    %c3 = arith.constant 3 : index
    %c0_23 = arith.constant 0 : index
    %c0_24 = arith.constant 0 : index
    %23 = vector.load %arg3[%c3, %c0_23, %c0_24] : memref<4x128x64xbf16, #tpu.memory_space<vmem>>, vector<1x128x64xbf16>
    %24 = vector.shape_cast %23 : vector<1x128x64xbf16> to vector<128x64xbf16>
    %cst_25 = arith.constant dense<0.000000e+00> : vector<128x64xf32>
    %25 = tpu.matmul %1, %24, %cst_25 {dimension_numbers = #tpu.dot_dimension_numbers<[1], [0], [0], [1], [0, 0, 1, 1], [], []>} : vector<128x128xbf16>, vector<128x64xbf16>, vector<128x64xf32> -> vector<128x64xf32>
    %26 = arith.truncf %25 : vector<128x64xf32> to vector<128x64xbf16>
    %c0_26 = arith.constant 0 : index
    %c3_27 = arith.constant 3 : index
    %c0_28 = arith.constant 0 : index
    %c0_29 = arith.constant 0 : index
    %27 = vector.load %arg4[%c0_26, %c3_27, %c0_28, %c0_29] : memref<1x4x128x64xbf16, #tpu.memory_space<vmem>>, vector<1x1x128x64xbf16>
    %28 = vector.shape_cast %27 : vector<1x1x128x64xbf16> to vector<128x64xbf16>
    %29 = vector.shape_cast %26 : vector<128x64xbf16> to vector<1x1x128x64xbf16>
    tpu.vector_store %arg4[%c0_26, %c3_27, %c0_28, %c0_29], %29 {strides = array<i32>} : memref<1x4x128x64xbf16, #tpu.memory_space<vmem>>, vector<1x1x128x64xbf16>,
    return
  }
  func.func @transform_0(%arg0: i32, %arg1: i32) -> (i32, i32, i32) {
    %c0_i32 = arith.constant 0 : i32
    %c0_i32_0 = arith.constant 0 : i32
    return %arg0, %arg1, %c0_i32 : i32, i32, i32
  }
  func.func @transform_1(%arg0: i32, %arg1: i32) -> (i32, i32, i32) {
    %c0_i32 = arith.constant 0 : i32
    %c0_i32_0 = arith.constant 0 : i32
    %c0_i32_1 = arith.constant 0 : i32
    %c0_i32_2 = arith.constant 0 : i32
    return %c0_i32, %c0_i32_0, %c0_i32_1 : i32, i32, i32
  }
  func.func @transform_2(%arg0: i32, %arg1: i32) -> (i32, i32, i32, i32) {
    %c0_i32 = arith.constant 0 : i32
    %c0_i32_0 = arith.constant 0 : i32
    %c0_i32_1 = arith.constant 0 : i32
    return %arg0, %c0_i32, %arg1, %c0_i32_0 : i32, i32, i32, i32
  }
}

</mosaic_0001>

<bundles_post_ra>
// kernel: tpu_custom_call.1
= control target key start
LH: loop header
LB: loop body
LE: loop exit
PB: predicated region body
PF: predicated region fallthrough
CT: control target
= control target key end

     0   :  { %s2217_s9 = smov 0   ;;  %s2219_s10 = smov 0   ;;  %s2632_s0 = inlined_call_operand.vmem [shape: bf16[2,384,128], index: 0, kind: input, shape index: {}]   ;;  %s2633_s1 = inlined_call_operand.vmem [shape: bf16[4,128,64], index: 1, kind: input, shape index: {}]   ;;  %s2634_s2 = inlined_call_operand.vmem [shape: bf16[2,4,384,64], index: 2, kind: output, shape index: {}]  }
   0x1   :  { %s2221_s11 = smov 0   ;;  %s2223_s12 = smov 0  }
   0x2   :  { %s2225_s13 = smov 0   ;;  %s2227_s14 = smov 0  }
   0x3   :  { %s2229_s15 = smov 0  }
   0x4 LB: > { %s21_s16 = sadd.s32 1, %s2192_s13  ;;  %s24_s17 = sadd.s32 1, %s2196_s14  ;;  %s2200_s15 = sphi %s2229_s15, %s12_s15   ;;  %s2196_s14 = sphi %s2227_s14, %s2641_s14   ;;  %s2192_s13 = sphi %s2225_s13, %s2640_s13   ;;  %s2188_s12 = sphi %s2223_s12, %s2639_s12   ;;  %s2184_s11 = sphi %s2221_s11, %s2638_s11   ;;  %s2180_s10 = sphi %s2219_s10, %s2637_s10   ;;  %s2176_s9 = sphi %s2217_s9, %s2636_s9  }
   0x5   : > { %p22_p0 = scmp.ge.s32.totalorder %s21_s16, 3  ;;  %s1579_s18 = sadd.s32 4294967295, %s2200_s15  }
   0x6   : > { %p92_p1 = scmp.ne.s32.totalorder %s2180_s10, %s2176_s9  ;;  %p93_p2 = scmp.eq.s32.totalorder %s1579_s18, 5 }
   0x7   : > { %s2643_s16 = smov (%p22_p0, %s21_s16), 0  ;;  %s2645_s17 = smov (!%p22_p0, %s24_s17), %s2196_s14 }
   0x8   : > { %s78_s19 = ssub.s32 %s2192_s13, %s2643_s16  ;;  %p26_p3 = scmp.ge.s32.totalorder %s2645_s17, 2 }
   0x9   : > { %p1583_p4 = scmp.ge.s32.totalorder %s2200_s15, 1  ;;  %p2261_p5 = por %p93_p2, %p92_p1 }
   0xa   : > { %p133_p6 = scmp.lt.s32.totalorder %s2200_s15, 7  ;;  %s2647_s17 = smov (%p26_p3, %s2645_s17), 0 }
   0xb   : > { %s77_s21 = ssub.s32 %s2196_s14, %s2647_s17  ;;  %s82_s23 = sadd.s32 1, %s2180_s10 }
   0xc   : > { %p134_p7 = pnand %p1583_p4, %p133_p6  ;;  %s79_s22 = sor.u32 %s78_s19, %s77_s21 }
   0xd   : > { %p80_p8 = scmp.eq.s32.totalorder %s79_s22, 0  ;;  %v2106_v0 = vld [vmem:[%s2633_s1] sm:$0xff] (!%p134_p7)   ;;  %s2277_s27 = sshll.u32 (!%p134_p7), %s2184_s11, 4  ;;  %v2108_v2 = vld [vmem:[%s2633_s1 + $0x8] sm:$0xff] (!%p134_p7)   ;;  %v2110_v4 = vld [vmem:[%s2633_s1 + $0x10] sm:$0xff] (!%p134_p7)   ;;  %vm459_vm0 = vcmask (!%p134_p7), 519168  }
   0xe   : > { %137 = sbr.rel (%p134_p7) target bundleno = 330 (0x14a), region = 28  ;;  %v2107_v1 = vld [vmem:[%s2633_s1 + $0x40] sm:$0xff] (!%p134_p7)   ;;  %p159_p9 = scmp.lt.s32.totalorder (!%p134_p7), %s2188_s12, 1  ;;  %1920 = vmatprep.subr.bf16.mxu0 (!%p134_p7), %v2106_v0  ;;  %v2109_v3 = vld [vmem:[%s2633_s1 + $0x48] sm:$0xff] (!%p134_p7)   ;;  %v2111_v5 = vld [vmem:[%s2633_s1 + $0x50] sm:$0xff] (!%p134_p7)  }
   0xf   : > { %s2272_s24 = scalar_select %p80_p8, %s2180_s10, %s82_s23  }
  0x10   : > { %p161_p10 = scmp.lt.s32.totalorder (!%p134_p7), %s2277_s27, 47  ;;  %1952 = vmatprep.subr.bf16.mxu1 (!%p134_p7), %v2107_v1  ;;  %1921 = vmatpush3.bf16.msra.mxu0 (!%p134_p7), %v2106_v0  ;;  %v2112_v6 = vld [vmem:[%s2633_s1 + $0x18] sm:$0xff] (!%p134_p7)   ;;  %v2114_v8 = vld [vmem:[%s2633_s1 + $0x20] sm:$0xff] (!%p134_p7)   ;;  %v2116_v10 = vld [vmem:[%s2633_s1 + $0x28] sm:$0xff] (!%p134_p7)  }
  0x11   : > { %1953 = vmatpush3.bf16.msra.mxu1 (!%p134_p7), %v2107_v1  ;;  %1922 = vmatprep.subr.bf16.mxu0 (!%p134_p7), %v2108_v2  ;;  %v2113_v7 = vld [vmem:[%s2633_s1 + $0x58] sm:$0xff] (!%p134_p7)   ;;  %v2115_v9 = vld [vmem:[%s2633_s1 + $0x60] sm:$0xff] (!%p134_p7)   ;;  %v2117_v12 = vld [vmem:[%s2633_s1 + $0x68] sm:$0xff] (!%p134_p7)  }
  0x12   : > { %1954 = vmatprep.subr.bf16.mxu1 (!%p134_p7), %v2109_v3  ;;  %v2118_v13 = vld [vmem:[%s2633_s1 + $0x30] sm:$0xff] (!%p134_p7)   ;;  %v2120_v15 = vld [vmem:[%s2633_s1 + $0x38] sm:$0xff] (!%p134_p7)   ;;  %v2124_v17 = vld [vmem:[%s2633_s1 + $0x80] sm:$0xff] (!%p134_p7)  }
  0x13   : > { %v2119_v14 = vld [vmem:[%s2633_s1 + $0x70] sm:$0xff] (!%p134_p7)   ;;  %v2121_v16 = vld [vmem:[%s2633_s1 + $0x78] sm:$0xff] (!%p134_p7)   ;;  %v2125_v18 = vld [vmem:[%s2633_s1 + $0xc0] sm:$0xff] (!%p134_p7)  }
  0x14   : > { %1923 = vmatpush3.bf16.msra.mxu0 (!%p134_p7), %v2108_v2  ;;  %v2126_v20 = vld [vmem:[%s2633_s1 + $0x88] sm:$0xff] (!%p134_p7)   ;;  %v2130_v23 = vld [vmem:[%s2633_s1 + $0x90] sm:$0xff] (!%p134_p7)   ;;  %v2132_v26 = vld [vmem:[%s2633_s1 + $0x98] sm:$0xff] (!%p134_p7)  }
  0x15   : > { %s160_s6 = scalar_select %p159_p9, %s2188_s12, 1  ;;  %1955 = vmatpush3.bf16.msra.mxu1 %v2109_v3  ;;  %1924 = vmatprep.subr.bf16.mxu0 %v2110_v4  ;;  %v2127_v21 = vld [vmem:[%s2633_s1 + $0xc8] sm:$0xff]   ;;  %v2131_v24 = vld [vmem:[%s2633_s1 + $0xd0] sm:$0xff]   ;;  %v2133_v27 = vld [vmem:[%s2633_s1 + $0xd8] sm:$0xff]  }
  0x16   : > { %s162_s11 = scalar_select %p161_p10, %s2277_s27, 47  ;;  %1956 = vmatprep.subr.bf16.mxu1 %v2111_v5  ;;  %v2136_v29 = vld [vmem:[%s2633_s1 + $0xa0] sm:$0xff]   ;;  %v2138_v32 = vld [vmem:[%s2633_s1 + $0xa8] sm:$0xff]   ;;  %v2142_v35 = vld [vmem:[%s2633_s1 + $0xb0] sm:$0xff]  }
  0x17   : > { %s2048_s21 = smul.u32 48, %s160_s6  ;;  %v2137_v30 = vld [vmem:[%s2633_s1 + $0xe0] sm:$0xff]   ;;  %v2139_v33 = vld [vmem:[%s2633_s1 + $0xe8] sm:$0xff]   ;;  %v2143_v36 = vld [vmem:[%s2633_s1 + $0xf0] sm:$0xff]  }
  0x18   : > { %1925 = vmatpush3.bf16.msra.mxu0 %v2110_v4  ;;  %v2144_v38 = vld [vmem:[%s2633_s1 + $0xb8] sm:$0xff]  }
  0x19   : > { %s164_s22 = sadd.s32 %s2048_s21, %s162_s11  ;;  %1957 = vmatpush3.bf16.msra.mxu1 %v2111_v5  ;;  %1926 = vmatprep.subr.bf16.mxu0 %v2112_v6  ;;  %v2145_v39 = vld [vmem:[%s2633_s1 + $0xf8] sm:$0xff]  }
  0x1a   : > { %s1586_s29 = sshll.u32 %s164_s22, 2  ;;  %1958 = vmatprep.subr.bf16.mxu1 %v2113_v7 }
  0x1b   : > { %s2313_s8 = scalar_lea.vmem %s2632_s0, %s1586_s29 }
  0x1c   : > { %1927 = vmatpush3.bf16.msra.mxu0 %v2112_v6  ;;  %v2319_v11 = vld [vmem:[%s2313_s8] sm:$0xff]   ;;  %v2345_v19 = vld [vmem:[%s2313_s8 + $0x8] sm:$0xff]   ;;  %v2354_v22 = vld [vmem:[%s2313_s8 + $0x10] sm:$0xff]  }
  0x1d   : > { %1959 = vmatpush3.bf16.msra.mxu1 %v2113_v7  ;;  %1928 = vmatprep.subr.bf16.mxu0 %v2114_v8  ;;  %v2129_v25 = vld [vmem:[%s2313_s8 + $0x18] sm:$0xff]   ;;  %v2134_v28 = vld [vmem:[%s2313_s8 + $0x20] sm:$0xff]   ;;  %v2135_v31 = vld [vmem:[%s2313_s8 + $0x28] sm:$0xff]  }
  0x1e   : > { %1960 = vmatprep.subr.bf16.mxu1 %v2115_v9  ;;  %1936 = vmatprep.mubr.bf16.mxu0 %v2319_v11  ;;  %v2140_v34 = vld [vmem:[%s2313_s8 + $0x30] sm:$0xff]   ;;  %v2141_v37 = vld [vmem:[%s2313_s8 + $0x38] sm:$0xff]   ;;  %s155_s8 = sand.u32 1, %s2176_s9   ;;  %s2049_s9 = smul.u32 (%p2261_p5), 192, %s2188_s12 }
  0x1f   : > { %1968 = vmatprep.mubr.bf16.mxu1 %v2319_v11  ;;  %s1584_s4 = sshll.u32 %s155_s8, 8 }
  0x20   : > { %1929 = vmatpush3.bf16.msra.mxu0 %v2114_v8  ;;  %s2408_s5 = scalar_lea.vmem [#allocation2], %s1584_s4  ;;  %s1214_s20 = sadd.s32 (%p2261_p5), %s2049_s9, %s2277_s27 }
  0x21   : > { %1961 = vmatpush3.bf16.msra.mxu1 %v2115_v9  ;;  %1930 = vmatprep.subr.bf16.mxu0 %v2116_v10  ;;  %s1789_s6 = sshll.u32 (%p2261_p5), %s1214_s20, 2 }
  0x22   : > { %1962 = vmatprep.subr.bf16.mxu1 %v2117_v12  ;;  %s2557_s12 = scalar_lea.vmem (%p2261_p5), %s2634_s2, %s1789_s6 }
  0x24   : > { %1931 = vmatpush3.bf16.msra.mxu0 %v2116_v10 }
  0x25   : > { %1963 = vmatpush3.bf16.msra.mxu1 %v2117_v12  ;;  %1932 = vmatprep.subr.bf16.mxu0 %v2118_v13 }
  0x26   : > { %1964 = vmatprep.subr.bf16.mxu1 %v2119_v14 }
  0x28   : > { %1933 = vmatpush3.bf16.msra.mxu0 %v2118_v13 }
  0x29   : > { %1965 = vmatpush3.bf16.msra.mxu1 %v2119_v14  ;;  %1934 = vmatprep.subr.bf16.mxu0 %v2120_v15 }
  0x2a   : > { %1966 = vmatprep.subr.bf16.mxu1 %v2121_v16 }
  0x2c   : > { %1935 = vmatpush3.bf16.msra.mxu0 %v2120_v15 }
  0x2d   : > { %1967 = vmatpush3.bf16.msra.mxu1 %v2121_v16  ;;  %1984 = vmatprep.subr.bf16.mxu0 %v2124_v17 }
  0x2e   : > { %2016 = vmatprep.subr.bf16.mxu1 %v2125_v18 }
  0x2f   : > { %1937 = vmatmul.mubr.bf16.vlgmr.msra.gmra.mrb[0].mxu0 %v2345_v19 }
  0x30   : > { %1969 = vmatmul.mubr.bf16.vlgmr.msra.gmra.mrb[0].mxu1 %v2345_v19  ;;  %1985 = vmatpush3.bf16.msra.mxu0 %v2124_v17 }
  0x31   : > { %2017 = vmatpush3.bf16.msra.mxu1 %v2125_v18  ;;  %1986 = vmatprep.subr.bf16.mxu0 %v2126_v20 }
  0x32   : > { %2018 = vmatprep.subr.bf16.mxu1 %v2127_v21  ;;  %1940 = vmatprep.mubr.bf16.mxu0 %v2354_v22 }
  0x33   : > { %1972 = vmatprep.mubr.bf16.mxu1 %v2354_v22 }
  0x34   : > { %1987 = vmatpush3.bf16.msra.mxu0 %v2126_v20 }
  0x35   : > { %2019 = vmatpush3.bf16.msra.mxu1 %v2127_v21  ;;  %1988 = vmatprep.subr.bf16.mxu0 %v2130_v23 }
  0x36   : > { %2020 = vmatprep.subr.bf16.mxu1 %v2131_v24 }
  0x37   : > { %1941 = vmatmul.mubr.bf16.gmra.mrb[4].mxu0 %v2129_v25 }
  0x38   : > { %1973 = vmatmul.mubr.bf16.gmra.mrb[4].mxu1 %v2129_v25  ;;  %1989 = vmatpush3.bf16.msra.mxu0 %v2130_v23 }
  0x39   : > { %2021 = vmatpush3.bf16.msra.mxu1 %v2131_v24  ;;  %1990 = vmatprep.subr.bf16.mxu0 %v2132_v26 }
  0x3a   : > { %2022 = vmatprep.subr.bf16.mxu1 %v2133_v27  ;;  %1944 = vmatprep.mubr.bf16.mxu0 %v2134_v28 }
  0x3b   : > { %1976 = vmatprep.mubr.bf16.mxu1 %v2134_v28 }
  0x3c   : > { %1991 = vmatpush3.bf16.msra.mxu0 %v2132_v26 }
  0x3d   : > { %2023 = vmatpush3.bf16.msra.mxu1 %v2133_v27  ;;  %1992 = vmatprep.subr.bf16.mxu0 %v2136_v29 }
  0x3e   : > { %2024 = vmatprep.subr.bf16.mxu1 %v2137_v30 }
  0x3f   : > { %1945 = vmatmul.mubr.bf16.gmra.mrb[8].mxu0 %v2135_v31 }
  0x40   : > { %1977 = vmatmul.mubr.bf16.gmra.mrb[8].mxu1 %v2135_v31  ;;  %1993 = vmatpush3.bf16.msra.mxu0 %v2136_v29 }
  0x41   : > { %2025 = vmatpush3.bf16.msra.mxu1 %v2137_v30  ;;  %1994 = vmatprep.subr.bf16.mxu0 %v2138_v32 }
  0x42   : > { %2026 = vmatprep.subr.bf16.mxu1 %v2139_v33  ;;  %1948 = vmatprep.mubr.bf16.mxu0 %v2140_v34 }
  0x43   : > { %1980 = vmatprep.mubr.bf16.mxu1 %v2140_v34 }
  0x44   : > { %1995 = vmatpush3.bf16.msra.mxu0 %v2138_v32 }
  0x45   : > { %2027 = vmatpush3.bf16.msra.mxu1 %v2139_v33  ;;  %1996 = vmatprep.subr.bf16.mxu0 %v2142_v35 }
  0x46   : > { %2028 = vmatprep.subr.bf16.mxu1 %v2143_v36 }
  0x47   : > { %1949 = vmatmul.mubr.bf16.gmra.mrb[12].mxu0 %v2141_v37 }
  0x48   : > { %1981 = vmatmul.mubr.bf16.gmra.mrb[12].mxu1 %v2141_v37  ;;  %1997 = vmatpush3.bf16.msra.mxu0 %v2142_v35 }
  0x49   : > { %2029 = vmatpush3.bf16.msra.mxu1 %v2143_v36  ;;  %1998 = vmatprep.subr.bf16.mxu0 %v2144_v38 }
  0x4a   : > { %2030 = vmatprep.subr.bf16.mxu1 %v2145_v39  ;;  %2000 = vmatprep.mubr.bf16.mxu0 %v2319_v11 }
  0x4b   : > { %2032 = vmatprep.mubr.bf16.mxu1 %v2319_v11 }
  0x4c   : > { %1999 = vmatpush3.bf16.msra.mxu0 %v2144_v38 }
  0x4d   : > { %2031 = vmatpush3.bf16.msra.mxu1 %v2145_v39 }
  0x4f   : > { %2001 = vmatmul.mubr.bf16.vlgmr.msra.gmra.mrb[16].mxu0 %v2345_v19 }
  0x50   : > { %2033 = vmatmul.mubr.bf16.vlgmr.msra.gmra.mrb[16].mxu1 %v2345_v19  ;;  %2004 = vmatprep.mubr.bf16.mxu0 %v2354_v22 }
  0x51   : > { %2036 = vmatprep.mubr.bf16.mxu1 %v2354_v22 }
  0x57   : > { %2005 = vmatmul.mubr.bf16.gmra.mrb[20].mxu0 %v2129_v25 }
  0x58   : > { %2037 = vmatmul.mubr.bf16.gmra.mrb[20].mxu1 %v2129_v25  ;;  %2008 = vmatprep.mubr.bf16.mxu0 %v2134_v28 }
  0x59   : > { %2040 = vmatprep.mubr.bf16.mxu1 %v2134_v28 }
  0x5f   : > { %2009 = vmatmul.mubr.bf16.gmra.mrb[24].mxu0 %v2135_v31 }
  0x60   : > { %2041 = vmatmul.mubr.bf16.gmra.mrb[24].mxu1 %v2135_v31  ;;  %2012 = vmatprep.mubr.bf16.mxu0 %v2140_v34 }
  0x61   : > { %2044 = vmatprep.mubr.bf16.mxu1 %v2140_v34 }
  0x67   : > { %2013 = vmatmul.mubr.bf16.gmra.mrb[28].mxu0 %v2141_v37 }
  0x68   : > { %2045 = vmatmul.mubr.bf16.gmra.mrb[28].mxu1 %v2141_v37 }
 0x102   : > { %v1938_v40 = vpop.f32.mrb[0].mxu0 }
 0x103   : > { %v1794_v41 = vpack.c.bf16 %v1938_v40, %v1938_v40  ;;  %v1970_v42 = vpop.f32.mrb[0].mxu1  ;;  %v332_v43 = vpop.f32.mrb[1].mxu0 }
 0x104   : > { %v1810_v44 = vpack.c.bf16 %v1970_v42, %v1970_v42  ;;  %v1792_v45 = vpack.c.bf16 %v332_v43, %v332_v43  ;;  %v575_v46 = vpop.f32.mrb[1].mxu1  ;;  %v1939_v47 = vpop.f32.mrb[2].mxu0 }
 0x105   : > { %462 = vst.msk [vmem:[%s2408_s5 + $0x8] sm:$0xf] %vm459_vm0, %v1794_v41  ;;  %v1808_v48 = vpack.c.bf16 %v575_v46, %v575_v46  ;;  %v1795_v49 = vpack.c.bf16 %v1939_v47, %v1939_v47  ;;  %v1971_v50 = vpop.f32.mrb[2].mxu1  ;;  %v335_v51 = vpop.f32.mrb[3].mxu0 }
 0x106   : > { %1661 = vst.msk [vmem:[%s2408_s5 + $0x48] sm:$0xf] %vm459_vm0, %v1810_v44  ;;  %460 = vst.msk [vmem:[%s2408_s5] sm:$0xf] %vm459_vm0, %v1792_v45  ;;  %v1811_v52 = vpack.c.bf16 %v1971_v50, %v1971_v50  ;;  %v1793_v53 = vpack.c.bf16 %v335_v51, %v335_v51  ;;  %v578_v54 = vpop.f32.mrb[3].mxu1 }
 0x107   : > { %1659 = vst.msk [vmem:[%s2408_s5 + $0x40] sm:$0xf] %vm459_vm0, %v1808_v48  ;;  %463 = vst.msk [vmem:[%s2408_s5 + $0xc] sm:$0xf] %vm459_vm0, %v1795_v49  ;;  %v1809_v55 = vpack.c.bf16 %v578_v54, %v578_v54 }
 0x108   : > { %1662 = vst.msk [vmem:[%s2408_s5 + $0x4c] sm:$0xf] %vm459_vm0, %v1811_v52  ;;  %461 = vst.msk [vmem:[%s2408_s5 + $0x4] sm:$0xf] %vm459_vm0, %v1793_v53 }
 0x109   : > { %1660 = vst.msk [vmem:[%s2408_s5 + $0x44] sm:$0xf] %vm459_vm0, %v1809_v55 }
 0x10a   : > { %v1942_v56 = vpop.f32.mrb[4].mxu0 }
 0x10b   : > { %v1798_v57 = vpack.c.bf16 %v1942_v56, %v1942_v56  ;;  %v1974_v58 = vpop.f32.mrb[4].mxu1  ;;  %v348_v59 = vpop.f32.mrb[5].mxu0 }
 0x10c   : > { %v1814_v60 = vpack.c.bf16 %v1974_v58, %v1974_v58  ;;  %v1796_v61 = vpack.c.bf16 %v348_v59, %v348_v59  ;;  %v591_v62 = vpop.f32.mrb[5].mxu1  ;;  %v1943_v63 = vpop.f32.mrb[6].mxu0 }
 0x10d   : > { %466 = vst.msk [vmem:[%s2408_s5 + $0x18] sm:$0xf] %vm459_vm0, %v1798_v57  ;;  %v1812_v0 = vpack.c.bf16 %v591_v62, %v591_v62  ;;  %v1799_v1 = vpack.c.bf16 %v1943_v63, %v1943_v63  ;;  %v1975_v2 = vpop.f32.mrb[6].mxu1  ;;  %v351_v3 = vpop.f32.mrb[7].mxu0 }
 0x10e   : > { %1665 = vst.msk [vmem:[%s2408_s5 + $0x58] sm:$0xf] %vm459_vm0, %v1814_v60  ;;  %464 = vst.msk [vmem:[%s2408_s5 + $0x10] sm:$0xf] %vm459_vm0, %v1796_v61  ;;  %v1815_v4 = vpack.c.bf16 %v1975_v2, %v1975_v2  ;;  %v1797_v5 = vpack.c.bf16 %v351_v3, %v351_v3  ;;  %v594_v6 = vpop.f32.mrb[7].mxu1 }
 0x10f   : > { %1663 = vst.msk [vmem:[%s2408_s5 + $0x50] sm:$0xf] %vm459_vm0, %v1812_v0  ;;  %467 = vst.msk [vmem:[%s2408_s5 + $0x1c] sm:$0xf] %vm459_vm0, %v1799_v1  ;;  %v1813_v7 = vpack.c.bf16 %v594_v6, %v594_v6 }
 0x110   : > { %1666 = vst.msk [vmem:[%s2408_s5 + $0x5c] sm:$0xf] %vm459_vm0, %v1815_v4  ;;  %465 = vst.msk [vmem:[%s2408_s5 + $0x14] sm:$0xf] %vm459_vm0, %v1797_v5 }
 0x111   : > { %1664 = vst.msk [vmem:[%s2408_s5 + $0x54] sm:$0xf] %vm459_vm0, %v1813_v7 }
 0x112   : > { %v1946_v8 = vpop.f32.mrb[8].mxu0 }
 0x113   : > { %v1802_v9 = vpack.c.bf16 %v1946_v8, %v1946_v8  ;;  %v1978_v10 = vpop.f32.mrb[8].mxu1  ;;  %v364_v11 = vpop.f32.mrb[9].mxu0 }
 0x114   : > { %v1818_v12 = vpack.c.bf16 %v1978_v10, %v1978_v10  ;;  %v1800_v13 = vpack.c.bf16 %v364_v11, %v364_v11  ;;  %v607_v14 = vpop.f32.mrb[9].mxu1  ;;  %v1947_v15 = vpop.f32.mrb[10].mxu0 }
 0x115   : > { %470 = vst.msk [vmem:[%s2408_s5 + $0x28] sm:$0xf] %vm459_vm0, %v1802_v9  ;;  %v1816_v16 = vpack.c.bf16 %v607_v14, %v607_v14  ;;  %v1803_v17 = vpack.c.bf16 %v1947_v15, %v1947_v15  ;;  %v1979_v18 = vpop.f32.mrb[10].mxu1  ;;  %v367_v19 = vpop.f32.mrb[11].mxu0 }
 0x116   : > { %1669 = vst.msk [vmem:[%s2408_s5 + $0x68] sm:$0xf] %vm459_vm0, %v1818_v12  ;;  %468 = vst.msk [vmem:[%s2408_s5 + $0x20] sm:$0xf] %vm459_vm0, %v1800_v13  ;;  %v1819_v20 = vpack.c.bf16 %v1979_v18, %v1979_v18  ;;  %v1801_v21 = vpack.c.bf16 %v367_v19, %v367_v19  ;;  %v610_v22 = vpop.f32.mrb[11].mxu1 }
 0x117   : > { %1667 = vst.msk [vmem:[%s2408_s5 + $0x60] sm:$0xf] %vm459_vm0, %v1816_v16  ;;  %471 = vst.msk [vmem:[%s2408_s5 + $0x2c] sm:$0xf] %vm459_vm0, %v1803_v17  ;;  %v1817_v23 = vpack.c.bf16 %v610_v22, %v610_v22 }
 0x118   : > { %1670 = vst.msk [vmem:[%s2408_s5 + $0x6c] sm:$0xf] %vm459_vm0, %v1819_v20  ;;  %469 = vst.msk [vmem:[%s2408_s5 + $0x24] sm:$0xf] %vm459_vm0, %v1801_v21 }
 0x119   : > { %1668 = vst.msk [vmem:[%s2408_s5 + $0x64] sm:$0xf] %vm459_vm0, %v1817_v23 }
 0x11a   : > { %v1950_v24 = vpop.f32.mrb[12].mxu0 }
 0x11b   : > { %v1806_v25 = vpack.c.bf16 %v1950_v24, %v1950_v24  ;;  %v1982_v26 = vpop.f32.mrb[12].mxu1  ;;  %v380_v27 = vpop.f32.mrb[13].mxu0 }
 0x11c   : > { %v1822_v28 = vpack.c.bf16 %v1982_v26, %v1982_v26  ;;  %v1804_v29 = vpack.c.bf16 %v380_v27, %v380_v27  ;;  %v623_v30 = vpop.f32.mrb[13].mxu1  ;;  %v1951_v31 = vpop.f32.mrb[14].mxu0 }
 0x11d   : > { %474 = vst.msk [vmem:[%s2408_s5 + $0x38] sm:$0xf] %vm459_vm0, %v1806_v25  ;;  %v1820_v32 = vpack.c.bf16 %v623_v30, %v623_v30  ;;  %v1807_v33 = vpack.c.bf16 %v1951_v31, %v1951_v31  ;;  %v1983_v34 = vpop.f32.mrb[14].mxu1  ;;  %v383_v35 = vpop.f32.mrb[15].mxu0 }
 0x11e   : > { %1673 = vst.msk [vmem:[%s2408_s5 + $0x78] sm:$0xf] %vm459_vm0, %v1822_v28  ;;  %472 = vst.msk [vmem:[%s2408_s5 + $0x30] sm:$0xf] %vm459_vm0, %v1804_v29  ;;  %v1823_v36 = vpack.c.bf16 %v1983_v34, %v1983_v34  ;;  %v1805_v37 = vpack.c.bf16 %v383_v35, %v383_v35  ;;  %v626_v38 = vpop.f32.mrb[15].mxu1 }
 0x11f   : > { %1671 = vst.msk [vmem:[%s2408_s5 + $0x70] sm:$0xf] %vm459_vm0, %v1820_v32  ;;  %475 = vst.msk [vmem:[%s2408_s5 + $0x3c] sm:$0xf] %vm459_vm0, %v1807_v33  ;;  %v1821_v39 = vpack.c.bf16 %v626_v38, %v626_v38 }
 0x120   : > { %1674 = vst.msk [vmem:[%s2408_s5 + $0x7c] sm:$0xf] %vm459_vm0, %v1823_v36  ;;  %473 = vst.msk [vmem:[%s2408_s5 + $0x34] sm:$0xf] %vm459_vm0, %v1805_v37 }
 0x121   : > { %1672 = vst.msk [vmem:[%s2408_s5 + $0x74] sm:$0xf] %vm459_vm0, %v1821_v39 }
 0x122   : > { %v2002_v40 = vpop.f32.mrb[16].mxu0 }
 0x123   : > { %v1826_v41 = vpack.c.bf16 %v2002_v40, %v2002_v40  ;;  %v2034_v42 = vpop.f32.mrb[16].mxu1  ;;  %v818_v43 = vpop.f32.mrb[17].mxu0  ;;  %v1232_v40 = vld [vmem:[%s2408_s5] sm:$0xff] (%p2261_p5)  }
 0x124   : > { %v1842_v44 = vpack.c.bf16 %v2034_v42, %v2034_v42  ;;  %v1824_v45 = vpack.c.bf16 %v818_v43, %v818_v43  ;;  %v1061_v46 = vpop.f32.mrb[17].mxu1  ;;  %v2003_v47 = vpop.f32.mrb[18].mxu0  ;;  %v1240_v42 = vld [vmem:[%s2408_s5 + $0x10] sm:$0xff] (%p2261_p5)   ;;  %v1244_v43 = vld [vmem:[%s2408_s5 + $0x18] sm:$0xff] (%p2261_p5)   ;;  %1233 = vst [vmem:[%s2557_s12] sm:$0xff] (%p2261_p5), %v1232_v40  }
 0x125   : > { %1717 = vst.msk [vmem:[%s2408_s5 + $0x88] sm:$0xf] %vm459_vm0, %v1826_v41  ;;  %v1840_v48 = vpack.c.bf16 %v1061_v46, %v1061_v46  ;;  %v1827_v49 = vpack.c.bf16 %v2003_v47, %v2003_v47  ;;  %v2035_v50 = vpop.f32.mrb[18].mxu1  ;;  %v821_v51 = vpop.f32.mrb[19].mxu0  ;;  %v1236_v41 = vld [vmem:[%s2408_s5 + $0x8] sm:$0xff] (%p2261_p5)   ;;  %1241 = vst [vmem:[%s2557_s12 + $0x10] sm:$0xff] (%p2261_p5), %v1240_v42  }
 0x126   : > { %1773 = vst.msk [vmem:[%s2408_s5 + $0xc8] sm:$0xf] %vm459_vm0, %v1842_v44  ;;  %1715 = vst.msk [vmem:[%s2408_s5 + $0x80] sm:$0xf] %vm459_vm0, %v1824_v45  ;;  %v1843_v52 = vpack.c.bf16 %v2035_v50, %v2035_v50  ;;  %v1825_v53 = vpack.c.bf16 %v821_v51, %v821_v51  ;;  %v1064_v54 = vpop.f32.mrb[19].mxu1  ;;  %v1248_v44 = vld [vmem:[%s2408_s5 + $0x20] sm:$0xff] (%p2261_p5)  }
 0x127   : > { %1771 = vst.msk [vmem:[%s2408_s5 + $0xc0] sm:$0xf] %vm459_vm0, %v1840_v48  ;;  %1718 = vst.msk [vmem:[%s2408_s5 + $0x8c] sm:$0xf] %vm459_vm0, %v1827_v49  ;;  %v1841_v55 = vpack.c.bf16 %v1064_v54, %v1064_v54  ;;  %v1252_v45 = vld [vmem:[%s2408_s5 + $0x28] sm:$0xff] (%p2261_p5)   ;;  %v1256_v46 = vld [vmem:[%s2408_s5 + $0x30] sm:$0xff] (%p2261_p5)  }
 0x128   : > { %1774 = vst.msk [vmem:[%s2408_s5 + $0xcc] sm:$0xf] %vm459_vm0, %v1843_v52  ;;  %1716 = vst.msk [vmem:[%s2408_s5 + $0x84] sm:$0xf] %vm459_vm0, %v1825_v53  ;;  %v1260_v47 = vld [vmem:[%s2408_s5 + $0x38] sm:$0xff] (%p2261_p5)   ;;  %v1264_v48 = vld [vmem:[%s2408_s5 + $0x40] sm:$0xff] (%p2261_p5)  }
 0x129   : > { %1772 = vst.msk [vmem:[%s2408_s5 + $0xc4] sm:$0xf] %vm459_vm0, %v1841_v55  ;;  %v1268_v49 = vld [vmem:[%s2408_s5 + $0x48] sm:$0xff] (%p2261_p5)   ;;  %v1272_v50 = vld [vmem:[%s2408_s5 + $0x50] sm:$0xff] (%p2261_p5)   ;;  %v1276_v51 = vld [vmem:[%s2408_s5 + $0x58] sm:$0xff] (%p2261_p5)  }
 0x12a   : > { %v2006_v56 = vpop.f32.mrb[20].mxu0  ;;  %v1280_v52 = vld [vmem:[%s2408_s5 + $0x60] sm:$0xff] (%p2261_p5)   ;;  %v1284_v53 = vld [vmem:[%s2408_s5 + $0x68] sm:$0xff] (%p2261_p5)   ;;  %v1288_v54 = vld [vmem:[%s2408_s5 + $0x70] sm:$0xff] (%p2261_p5)   ;;  %1237 = vst [vmem:[%s2557_s12 + $0x8] sm:$0xff] (%p2261_p5), %v1236_v41  }
 0x12b   : > { %v1830_v57 = vpack.c.bf16 %v2006_v56, %v2006_v56  ;;  %v2038_v58 = vpop.f32.mrb[20].mxu1  ;;  %v834_v59 = vpop.f32.mrb[21].mxu0  ;;  %1245 = vst [vmem:[%s2557_s12 + $0x18] sm:$0xff] (%p2261_p5), %v1244_v43   ;;  %1249 = vst [vmem:[%s2557_s12 + $0x20] sm:$0xff] (%p2261_p5), %v1248_v44   ;;  %v1292_v55 = vld [vmem:[%s2408_s5 + $0x78] sm:$0xff] (%p2261_p5)  }
 0x12c   : > { %v1846_v60 = vpack.c.bf16 %v2038_v58, %v2038_v58  ;;  %v1828_v61 = vpack.c.bf16 %v834_v59, %v834_v59  ;;  %v1077_v62 = vpop.f32.mrb[21].mxu1  ;;  %v2007_v63 = vpop.f32.mrb[22].mxu0  ;;  %1253 = vst [vmem:[%s2557_s12 + $0x28] sm:$0xff] (%p2261_p5), %v1252_v45   ;;  %1257 = vst [vmem:[%s2557_s12 + $0x30] sm:$0xff] (%p2261_p5), %v1256_v46  }
 0x12d   : > { %1721 = vst.msk [vmem:[%s2408_s5 + $0x98] sm:$0xf] %vm459_vm0, %v1830_v57  ;;  %v1844_v0 = vpack.c.bf16 %v1077_v62, %v1077_v62  ;;  %v1831_v1 = vpack.c.bf16 %v2007_v63, %v2007_v63  ;;  %v2039_v2 = vpop.f32.mrb[22].mxu1  ;;  %v837_v3 = vpop.f32.mrb[23].mxu0  ;;  %1261 = vst [vmem:[%s2557_s12 + $0x38] sm:$0xff] (%p2261_p5), %v1260_v47  }
 0x12e   : > { %1777 = vst.msk [vmem:[%s2408_s5 + $0xd8] sm:$0xf] %vm459_vm0, %v1846_v60  ;;  %1719 = vst.msk [vmem:[%s2408_s5 + $0x90] sm:$0xf] %vm459_vm0, %v1828_v61  ;;  %v1847_v4 = vpack.c.bf16 %v2039_v2, %v2039_v2  ;;  %v1829_v5 = vpack.c.bf16 %v837_v3, %v837_v3  ;;  %v1080_v6 = vpop.f32.mrb[23].mxu1  ;;  %v1300_v57 = vld [vmem:[%s2408_s5 + $0x88] sm:$0xff] (%p2261_p5)  }
 0x12f   : > { %1775 = vst.msk [vmem:[%s2408_s5 + $0xd0] sm:$0xf] %vm459_vm0, %v1844_v0  ;;  %1722 = vst.msk [vmem:[%s2408_s5 + $0x9c] sm:$0xf] %vm459_vm0, %v1831_v1  ;;  %v1845_v7 = vpack.c.bf16 %v1080_v6, %v1080_v6  ;;  %v1296_v56 = vld [vmem:[%s2408_s5 + $0x80] sm:$0xff] (%p2261_p5)   ;;  %v1332_v1 = vld [vmem:[%s2408_s5 + $0xc8] sm:$0xff] (%p2261_p5)  }
 0x130   : > { %1778 = vst.msk [vmem:[%s2408_s5 + $0xdc] sm:$0xf] %vm459_vm0, %v1847_v4  ;;  %1720 = vst.msk [vmem:[%s2408_s5 + $0x94] sm:$0xf] %vm459_vm0, %v1829_v5  ;;  %v1328_v0 = vld [vmem:[%s2408_s5 + $0xc0] sm:$0xff] (%p2261_p5)  }
 0x131   : > { %1776 = vst.msk [vmem:[%s2408_s5 + $0xd4] sm:$0xf] %vm459_vm0, %v1845_v7  ;;  %1265 = vst [vmem:[%s2557_s12 + $0xc0] sm:$0xff] (%p2261_p5), %v1264_v48  }
 0x132   : > { %v2010_v8 = vpop.f32.mrb[24].mxu0  ;;  %1269 = vst [vmem:[%s2557_s12 + $0xc8] sm:$0xff] (%p2261_p5), %v1268_v49   ;;  %1273 = vst [vmem:[%s2557_s12 + $0xd0] sm:$0xff] (%p2261_p5), %v1272_v50  }
 0x133   : > { %v1834_v9 = vpack.c.bf16 %v2010_v8, %v2010_v8  ;;  %v2042_v10 = vpop.f32.mrb[24].mxu1  ;;  %v850_v11 = vpop.f32.mrb[25].mxu0  ;;  %1277 = vst [vmem:[%s2557_s12 + $0xd8] sm:$0xff] (%p2261_p5), %v1276_v51   ;;  %1281 = vst [vmem:[%s2557_s12 + $0xe0] sm:$0xff] (%p2261_p5), %v1280_v52  }
 0x134   : > { %v1850_v12 = vpack.c.bf16 %v2042_v10, %v2042_v10  ;;  %v1832_v13 = vpack.c.bf16 %v850_v11, %v850_v11  ;;  %v1093_v14 = vpop.f32.mrb[25].mxu1  ;;  %v2011_v15 = vpop.f32.mrb[26].mxu0  ;;  %1285 = vst [vmem:[%s2557_s12 + $0xe8] sm:$0xff] (%p2261_p5), %v1284_v53   ;;  %1289 = vst [vmem:[%s2557_s12 + $0xf0] sm:$0xff] (%p2261_p5), %v1288_v54  }
 0x135   : > { %1725 = vst.msk [vmem:[%s2408_s5 + $0xa8] sm:$0xf] %vm459_vm0, %v1834_v9  ;;  %v1848_v16 = vpack.c.bf16 %v1093_v14, %v1093_v14  ;;  %v1835_v17 = vpack.c.bf16 %v2011_v15, %v2011_v15  ;;  %v2043_v18 = vpop.f32.mrb[26].mxu1  ;;  %v853_v19 = vpop.f32.mrb[27].mxu0  ;;  %1293 = vst [vmem:[%s2557_s12 + $0xf8] sm:$0xff] (%p2261_p5), %v1292_v55  }
 0x136   : > { %1781 = vst.msk [vmem:[%s2408_s5 + $0xe8] sm:$0xf] %vm459_vm0, %v1850_v12  ;;  %1723 = vst.msk [vmem:[%s2408_s5 + $0xa0] sm:$0xf] %vm459_vm0, %v1832_v13  ;;  %v1851_v20 = vpack.c.bf16 %v2043_v18, %v2043_v18  ;;  %v1833_v21 = vpack.c.bf16 %v853_v19, %v853_v19  ;;  %v1096_v22 = vpop.f32.mrb[27].mxu1  ;;  %v1308_v59 = vld [vmem:[%s2408_s5 + $0x98] sm:$0xff] (%p2261_p5)  }
 0x137   : > { %1779 = vst.msk [vmem:[%s2408_s5 + $0xe0] sm:$0xf] %vm459_vm0, %v1848_v16  ;;  %1726 = vst.msk [vmem:[%s2408_s5 + $0xac] sm:$0xf] %vm459_vm0, %v1835_v17  ;;  %v1849_v23 = vpack.c.bf16 %v1096_v22, %v1096_v22  ;;  %v1304_v58 = vld [vmem:[%s2408_s5 + $0x90] sm:$0xff] (%p2261_p5)   ;;  %v1340_v3 = vld [vmem:[%s2408_s5 + $0xd8] sm:$0xff] (%p2261_p5)  }
 0x138   : > { %1782 = vst.msk [vmem:[%s2408_s5 + $0xec] sm:$0xf] %vm459_vm0, %v1851_v20  ;;  %1724 = vst.msk [vmem:[%s2408_s5 + $0xa4] sm:$0xf] %vm459_vm0, %v1833_v21  ;;  %v1336_v2 = vld [vmem:[%s2408_s5 + $0xd0] sm:$0xff] (%p2261_p5)  }
 0x139   : > { %1780 = vst.msk [vmem:[%s2408_s5 + $0xe4] sm:$0xf] %vm459_vm0, %v1849_v23  ;;  %1297 = vst [vmem:[%s2557_s12 + $0x180] sm:$0xff] (%p2261_p5), %v1296_v56  }
 0x13a   : > { %v2014_v24 = vpop.f32.mrb[28].mxu0  ;;  %1301 = vst [vmem:[%s2557_s12 + $0x188] sm:$0xff] (%p2261_p5), %v1300_v57   ;;  %1305 = vst [vmem:[%s2557_s12 + $0x190] sm:$0xff] (%p2261_p5), %v1304_v58  }
 0x13b   : > { %v1838_v25 = vpack.c.bf16 %v2014_v24, %v2014_v24  ;;  %v2046_v26 = vpop.f32.mrb[28].mxu1  ;;  %v866_v27 = vpop.f32.mrb[29].mxu0  ;;  %1211 = sbr.rel (!%p2261_p5) target bundleno = 330 (0x14a), region = 32  ;;  %1309 = vst [vmem:[%s2557_s12 + $0x198] sm:$0xff] (%p2261_p5), %v1308_v59   ;;  %1329 = vst [vmem:[%s2557_s12 + $0x240] sm:$0xff] (%p2261_p5), %v1328_v0  }
 0x13c   : > { %v1854_v28 = vpack.c.bf16 %v2046_v26, %v2046_v26  ;;  %v1836_v29 = vpack.c.bf16 %v866_v27, %v866_v27  ;;  %v1109_v30 = vpop.f32.mrb[29].mxu1  ;;  %v2015_v31 = vpop.f32.mrb[30].mxu0  ;;  %1333 = vst [vmem:[%s2557_s12 + $0x248] sm:$0xff] (%p2261_p5), %v1332_v1   ;;  %1337 = vst [vmem:[%s2557_s12 + $0x250] sm:$0xff] (%p2261_p5), %v1336_v2  }
 0x13d   : > { %1729 = vst.msk [vmem:[%s2408_s5 + $0xb8] sm:$0xf] %vm459_vm0, %v1838_v25  ;;  %v1852_v32 = vpack.c.bf16 %v1109_v30, %v1109_v30  ;;  %v1839_v33 = vpack.c.bf16 %v2015_v31, %v2015_v31  ;;  %v2047_v34 = vpop.f32.mrb[30].mxu1  ;;  %v869_v35 = vpop.f32.mrb[31].mxu0  ;;  %1341 = vst [vmem:[%s2557_s12 + $0x258] sm:$0xff] (%p2261_p5), %v1340_v3  }
 0x13e   : > { %1785 = vst.msk [vmem:[%s2408_s5 + $0xf8] sm:$0xf] %vm459_vm0, %v1854_v28  ;;  %1727 = vst.msk [vmem:[%s2408_s5 + $0xb0] sm:$0xf] %vm459_vm0, %v1836_v29  ;;  %v1855_v36 = vpack.c.bf16 %v2047_v34, %v2047_v34  ;;  %v1837_v37 = vpack.c.bf16 %v869_v35, %v869_v35  ;;  %v1112_v38 = vpop.f32.mrb[31].mxu1  ;;  %v1316_v61 = vld [vmem:[%s2408_s5 + $0xa8] sm:$0xff] (%p2261_p5)  }
 0x13f   : > { %1783 = vst.msk [vmem:[%s2408_s5 + $0xf0] sm:$0xf] %vm459_vm0, %v1852_v32  ;;  %1730 = vst.msk [vmem:[%s2408_s5 + $0xbc] sm:$0xf] %vm459_vm0, %v1839_v33  ;;  %v1853_v39 = vpack.c.bf16 %v1112_v38, %v1112_v38  ;;  %v1312_v60 = vld [vmem:[%s2408_s5 + $0xa0] sm:$0xff] (%p2261_p5)   ;;  %v1348_v5 = vld [vmem:[%s2408_s5 + $0xe8] sm:$0xff] (%p2261_p5)  }
 0x140   : > { %1786 = vst.msk [vmem:[%s2408_s5 + $0xfc] sm:$0xf] %vm459_vm0, %v1855_v36  ;;  %1728 = vst.msk [vmem:[%s2408_s5 + $0xb4] sm:$0xf] %vm459_vm0, %v1837_v37  ;;  %v1344_v4 = vld [vmem:[%s2408_s5 + $0xe0] sm:$0xff] (%p2261_p5)  }
 0x141   : > { %1784 = vst.msk [vmem:[%s2408_s5 + $0xf4] sm:$0xf] %vm459_vm0, %v1853_v39  ;;  %1313 = vst [vmem:[%s2557_s12 + $0x1a0] sm:$0xff] (%p2261_p5), %v1312_v60  }
 0x142   : > { %1317 = vst [vmem:[%s2557_s12 + $0x1a8] sm:$0xff] %v1316_v61   ;;  %1345 = vst [vmem:[%s2557_s12 + $0x260] sm:$0xff] %v1344_v4  }
 0x143   : > { %1349 = vst [vmem:[%s2557_s12 + $0x268] sm:$0xff] %v1348_v5  }
 0x146   : > { %v1324_v63 = vld [vmem:[%s2408_s5 + $0xb8] sm:$0xff]  }
 0x147   : > { %v1320_v62 = vld [vmem:[%s2408_s5 + $0xb0] sm:$0xff]   ;;  %1325 = vst [vmem:[%s2557_s12 + $0x1b8] sm:$0xff] %v1324_v63   ;;  %v1356_v7 = vld [vmem:[%s2408_s5 + $0xf8] sm:$0xff]  }
 0x148   : > { %1321 = vst [vmem:[%s2557_s12 + $0x1b0] sm:$0xff] %v1320_v62   ;;  %v1352_v6 = vld [vmem:[%s2408_s5 + $0xf0] sm:$0xff]   ;;  %1357 = vst [vmem:[%s2557_s12 + $0x278] sm:$0xff] %v1356_v7  }
 0x149   : > { %1353 = vst [vmem:[%s2557_s12 + $0x270] sm:$0xff] %v1352_v6  }
 0x14a PF: > { %s12_s15 = sadd.s32 1, %s2200_s15   ;;  %s2636_s9 = smov %s2180_s10 }
 0x14b   : > { %p9_p11 = scmp.ge.s32.totalorder %s12_s15, 8   ;;  %s2637_s10 = smov %s2272_s24 }
 0x14c   : > { %s2638_s11 = smov %s2192_s13  ;;  %s2639_s12 = smov %s2196_s14 }
 0x14d   : > { %s2640_s13 = smov %s2643_s16  ;;  %s2641_s14 = smov %s2647_s17 }
 0x14e   :  { %11 = sbr.rel (!%p9_p11) target bundleno = 4 (0x4), region = 105 }

</bundles_post_ra>
